<compile_context>
chip_gen: v6e
topology: v6e:2x2x1
jax: 0.10.0
libtpu: 0.0.40
codegen_flags: <defaults>
</compile_context>

<pallas_src>
import functools
import warnings

import jax
import jax.numpy as jnp
from jax.experimental import pallas as pl
from jax.experimental.pallas import tpu as pltpu


def _identity_kernel(x_ref, o_ref):
    # vreg-wide pass-through.  With lane-dense, sublane-aligned tiles this is
    # unmasked vld/vst and the kernel is purely HBM-bandwidth bound.
    o_ref[...] = x_ref[...]


# Packed dtypes tile at (16,128) / (32,128); keep row tiling aligned to that.
_SUBLANE_BY_ITEMSIZE = {4: 8, 2: 16, 1: 32}

# Widest lane extents first: bigger unmasked store/DMA descriptors, and fewer
# rows means sublane alignment is checked before falling back.
_LANE_WIDTHS = (64 * 128, 32 * 128, 16 * 128, 8 * 128, 4 * 128, 2 * 128, 128)

_SMALL_BYPASS_BYTES = 1 << 20        # aliased identity below ~1 MiB: skip kernel
_MAX_SINGLE_BLOCK_BYTES = 8 << 20    # cap for any single full-extent VMEM block


def _vmem_capacity_bytes() -> int:
    """Physical VMEM per TensorCore; conservative 64 MiB (v7x) if unknown."""
    try:
        info = pltpu.get_tpu_info()
        cap = getattr(info, "vmem_capacity_bytes", None)
        if cap:
            return int(cap)
    except Exception:  # pragma: no cover - info query is best-effort only
        pass
    return 64 * 1024 * 1024


def _target_tile_bytes(vmem_cap: int) -> int:
    """Per-buffer tile target: 16 MiB on 128 MiB-VMEM parts (v5e/v6e) to cut
    grid-step overhead, 8 MiB on 64 MiB parts (v7x) to keep pipeline headroom."""
    if vmem_cap >= 96 * 1024 * 1024:
        return 16 << 20
    return 8 << 20


def _vmem_limit_for(tile_bytes: int, vmem_cap: int) -> int:
    """Derived scoped-VMEM limit: 2 operands x 2 pipeline buffers x tile plus a
    ~4 MiB margin, clamped to <= 3/4 of physical VMEM so the compiler keeps
    scratch headroom on every generation (critical on v7x's 64 MiB)."""
    need = 4 * tile_bytes + (4 << 20)
    return int(min(max(need, 8 << 20), (vmem_cap * 3) // 4))


def _pick_tile_rows(rows, width, itemsize, sublane, target_bytes):
    """Largest sublane-aligned row-tile that divides `rows` and keeps each tile
    buffer near `target_bytes`; then nudge the grid-step count to be even
    (>= 2) when it costs at most a 2x smaller tile (v7x has 2 TensorCores)."""
    row_bytes = width * itemsize
    tile = (target_bytes // row_bytes) // sublane * sublane
    tile = min(rows, max(sublane, tile))
    while rows % tile != 0:
        tile -= sublane
    steps = rows // tile
    if steps % 2 == 1:
        lo = max(sublane, tile // 2)
        t = tile - sublane
        while t >= lo:
            if rows % t == 0 and (rows // t) % 2 == 0:
                tile = t
                break
            t -= sublane
    return tile


def _choose_layout(n, itemsize, target_bytes):
    """Find a lane-dense 2D view (rows, width) of an n-element array that needs
    no padding.  Prefer the widest lane extent with sublane-aligned rows; if no
    aligned layout exists, allow a single full-extent block only when it is
    small enough to be VMEM-safe."""
    sublane = _SUBLANE_BY_ITEMSIZE.get(itemsize, 8)
    fallback = None
    for width in _LANE_WIDTHS:
        if n % width != 0:
            continue
        rows = n // width
        if rows % sublane == 0:
            tile = _pick_tile_rows(rows, width, itemsize, sublane, target_bytes)
            return rows, width, tile
        if fallback is None and rows * width * itemsize <= _MAX_SINGLE_BLOCK_BYTES:
            fallback = (rows, width, rows)  # single full-extent block, small slab
    return fallback


def identity_pallas(x: jax.Array, *, force_kernel: bool = False) -> jax.Array:
    """Identity pass over `x`.

    Standalone smoke test only: ModelName.forward never calls this because the
    reference forward is empty.  The true optimum for an aliased identity is
    zero DMA, so the default path simply returns `x`; the Pallas memcpy kernel
    (bandwidth smoke test) runs only when force_kernel=True or the array is
    large enough that launch overhead is amortized.  Output aliases the input,
    so under jit-with-donation the copy is in place."""
    n = x.size
    itemsize = jnp.dtype(x.dtype).itemsize
    nbytes = n * itemsize

    if not force_kernel and nbytes <= _SMALL_BYPASS_BYTES:
        # Tiny input: the kernel would be 100% dispatch + single-step overhead.
        return x

    vmem_cap = _vmem_capacity_bytes()
    layout = _choose_layout(n, itemsize, _target_tile_bytes(vmem_cap))

    if layout is None:
        if nbytes <= _MAX_SINGLE_BLOCK_BYTES:
            # No 128-lane divisor, but small: one full-extent block is legal
            # and VMEM-safe.
            ndim = x.ndim
            params = pltpu.CompilerParams(
                dimension_semantics=("parallel",),
                vmem_limit_bytes=_vmem_limit_for(nbytes, vmem_cap),
            )
            return pl.pallas_call(
                _identity_kernel,
                out_shape=jax.ShapeDtypeStruct(x.shape, x.dtype),
                grid=(1,),
                in_specs=[pl.BlockSpec(x.shape, lambda i: (0,) * ndim)],
                out_specs=pl.BlockSpec(x.shape, lambda i: (0,) * ndim),
                input_output_aliases={0: 0},
                compiler_params=params,
            )(x)
        # TODO(synk): large array with no 128-lane divisor — a chunked
        # memory_space=pl.ANY + pltpu.make_async_copy path would keep the HBM
        # roofline; not needed for this degenerate module, so return the
        # aliased identity directly instead of risking a VMEM-unbounded block.
        return x

    rows, width, tile_rows = layout
    tile_bytes = tile_rows * width * itemsize
    params = pltpu.CompilerParams(
        dimension_semantics=("parallel",),  # shard grid steps across v7x's 2 TCs
        vmem_limit_bytes=_vmem_limit_for(tile_bytes, vmem_cap),
    )

    slab = x.reshape(rows, width)  # metadata-only reshape: no pad, no HBM pass
    grid = (rows // tile_rows,)

    out = pl.pallas_call(
        _identity_kernel,
        out_shape=jax.ShapeDtypeStruct((rows, width), x.dtype),
        grid=grid,
        in_specs=[pl.BlockSpec((tile_rows, width), lambda i: (i, 0))],
        out_specs=pl.BlockSpec((tile_rows, width), lambda i: (i, 0)),
        input_output_aliases={0: 0},  # in place when the caller donates the input
        compiler_params=params,
    )(slab)
    return out.reshape(x.shape)


class Config:
    def __init__(self, batch_size):
        self.batch_size = batch_size


class ModelName:
    """JAX/Pallas mirror of the PyTorch ModelName module."""

    def __init__(self, config: Config):
        self.batch_size = config.batch_size
        # No parameters to initialize: the reference __init__ defines none.

    def forward(self, *x):
        # The PyTorch forward body is `pass`, i.e. it returns None and does no
        # computation on its inputs.  We reproduce that exactly (the identity
        # kernel above is intentionally NOT wired into this path).
        # TODO(synk): reference forward is empty; no compute to translate.
        return None

    __call__ = forward


if __name__ == "__main__":
    # Suppress a potential (harmless) donation note so stdout/stderr stay clean.
    warnings.filterwarnings("ignore", message="Some donated buffers were not usable")

    key = jax.random.PRNGKey(0)
    batch, channels, spatial = 2, 4, 16
    shape = (batch, channels, spatial, spatial)
    x = jax.random.normal(key, shape, jnp.float32)

    # Force the Pallas kernel path (the production path would bypass a tiny
    # aliased identity entirely) and donate the input so the pallas-level
    # input/output alias makes the copy in place (no extra HBM writeback).
    identity = jax.jit(
        functools.partial(identity_pallas, force_kernel=True), donate_argnums=0
    )
    y = identity(x)
    jax.block_until_ready(y)

    # `x` was donated; rebuild the deterministic reference for verification.
    x_ref = jax.random.normal(jax.random.PRNGKey(0), shape, jnp.float32)
    assert y.shape == shape and y.dtype == jnp.float32
    assert bool(jnp.allclose(y, x_ref))

    # Also exercise the zero-DMA production bypass for the same small input.
    y_bypass = identity_pallas(x_ref)
    assert bool(jnp.allclose(y_bypass, x_ref))

    # Invoke the model forward with the same semantics as the PyTorch module.
    model = ModelName(Config(batch_size=batch))
    out = model(x_ref)
    assert out is None  # matches PyTorch forward returning None

    print("KERNEL_OK")
</pallas_src>

<mosaic_0001>
module attributes {stable_mosaic.version = 11 : i64} {
  func.func @_identity_kernel(%arg0: i32, %arg1: memref<8x256xf32, #tpu.memory_space<vmem>>, %arg2: memref<8x256xf32, #tpu.memory_space<vmem>>) attributes {dimension_semantics = [#tpu.dimension_semantics<parallel>], iteration_bounds = array<i64: 1>, scalar_prefetch = 0 : i64, scratch_operands = 0 : i64, tpu.core_type = #tpu.core_type<tc>, window_params = [{transform_indices = @transform_0, window_bounds = array<i64: 8, 256>}, {transform_indices = @transform_1, window_bounds = array<i64: 8, 256>}]} {
    %c0 = arith.constant 0 : index
    %c0_0 = arith.constant 0 : index
    %0 = vector.load %arg1[%c0, %c0_0] : memref<8x256xf32, #tpu.memory_space<vmem>>, vector<8x256xf32>
    %c0_1 = arith.constant 0 : index
    %c0_2 = arith.constant 0 : index
    %1 = vector.load %arg2[%c0_1, %c0_2] : memref<8x256xf32, #tpu.memory_space<vmem>>, vector<8x256xf32>
    tpu.vector_store %arg2[%c0_1, %c0_2], %0 {strides = array<i32>} : memref<8x256xf32, #tpu.memory_space<vmem>>, vector<8x256xf32>,
    return
  }
  func.func @transform_0(%arg0: i32) -> (i32, i32) {
    %c0_i32 = arith.constant 0 : i32
    %c0_i32_0 = arith.constant 0 : i32
    return %arg0, %c0_i32 : i32, i32
  }
  func.func @transform_1(%arg0: i32) -> (i32, i32) {
    %c0_i32 = arith.constant 0 : i32
    %c0_i32_0 = arith.constant 0 : i32
    return %arg0, %c0_i32 : i32, i32
  }
}

</mosaic_0001>

<bundles_post_ra>
// kernel: identity_pallas.1
= control target key start
LH: loop header
LB: loop body
LE: loop exit
PB: predicated region body
PF: predicated region fallthrough
CT: control target
= control target key end

     0   :  { %s38_s0 = inlined_call_operand.vmem [shape: f32[8,256], index: 0, kind: input, shape index: {}, may-alias: {0,1}]   ;;  %s39_s1 = inlined_call_operand.vmem [shape: f32[8,256], index: 1, kind: output, shape index: {}, may-alias: {0,1}]  }
   0x1   :  { %v8_v0 = vld [vmem:[%s38_s0] sm:$0xff]  ;;  %v9_v1 = vld [vmem:[%s38_s0 + $0x8] sm:$0xff] }
   0x2   :  { %10 = vst [vmem:[%s39_s1] sm:$0xff] %v8_v0  ;;  %11 = vst [vmem:[%s39_s1 + $0x8] sm:$0xff] %v9_v1 }

</bundles_post_ra>
